<compile_context>
chip_gen: v5e
topology: v5e:2x2
jax: 0.10.0
libtpu: 0.0.40
codegen_flags: <defaults>
</compile_context>

<pallas_src>
import jax
import jax.numpy as jnp
from jax import lax
from jax.experimental import pallas as pl
from jax.experimental.pallas import tpu as pltpu

TL = 128          # lane tile (hardware lane width)
SUB = 16          # sublane rounding (covers f32 (8,128) and bf16 (16,128) tiles)
TM_MAX = 2048     # max rows per grid block (1 MiB f32 per input per buffer)
CH = 32           # rows per streaming chunk inside a block (4 f32 vregs/input)
MIN_TILES = 8     # aim for >= 8 grid tiles so v7x's 2 TensorCores stay busy
SMOOTH = 1.0
BCE_WEIGHT = 0.5


def _round_up(x, m):
    return ((x + m - 1) // m) * m


def _chunk_partials(x_ref, t_ref, row0, nrows, n_valid, masked):
    """Lane-wise partial contributions of `nrows` rows starting at `row0`.

    Returns (x*t, x, t, bce') each of shape (nrows, TL) in f32, where
    bce' = max(x,0) + log1p(exp(-|x|))  (the -x*t term is recovered in the
    wrapper from the x*t sum).  When `masked`, elements whose flat index
    within this block is >= n_valid are zeroed in every term.
    """
    x = x_ref[pl.ds(row0, nrows), :].astype(jnp.float32)
    t = t_ref[pl.ds(row0, nrows), :].astype(jnp.float32)
    valid = None
    if masked:
        r = lax.broadcasted_iota(jnp.int32, (nrows, TL), 0)
        c = lax.broadcasted_iota(jnp.int32, (nrows, TL), 1)
        valid = (row0 + r) * TL + c < n_valid
        x = jnp.where(valid, x, 0.0)
        t = jnp.where(valid, t, 0.0)
    b = jnp.maximum(x, 0.0) + jnp.log1p(jnp.exp(-jnp.abs(x)))
    if masked:
        b = jnp.where(valid, b, 0.0)
    return x * t, x, t, b


def _make_kernel(tm, num_tiles, n_last_valid, mask_last):
    """Builds the per-tile partial-sum kernel, specialized on static sizes."""
    n_chunks, rem = divmod(tm, CH)

    def run(x_ref, t_ref, o_ref, masked):
        sums = None
        if n_chunks > 0:
            zero = jnp.zeros((CH, TL), jnp.float32)

            def body(c, accs):
                row0 = pl.multiple_of(c * CH, CH)
                p = _chunk_partials(x_ref, t_ref, row0, CH, n_last_valid, masked)
                return tuple(a + v for a, v in zip(accs, p))

            accs = lax.fori_loop(0, n_chunks, body, (zero, zero, zero, zero),
                                 unroll=min(4, n_chunks))
            sums = [jnp.sum(a, axis=0, keepdims=True) for a in accs]   # (1, TL)
        if rem > 0:
            p = _chunk_partials(x_ref, t_ref, n_chunks * CH, rem,
                                n_last_valid, masked)
            rsums = [jnp.sum(v, axis=0, keepdims=True) for v in p]
            sums = rsums if sums is None else [s + r for s, r in zip(sums, rsums)]
        # Single (4, TL) store: [sum(x*t), sum(x), sum(t), sum(bce')] per lane.
        o_ref[0] = jnp.concatenate(sums, axis=0)

    def kernel(x_ref, t_ref, o_ref):
        if not mask_last:
            run(x_ref, t_ref, o_ref, False)
        elif num_tiles == 1:
            run(x_ref, t_ref, o_ref, True)
        else:
            is_last = pl.program_id(0) == num_tiles - 1

            @pl.when(jnp.logical_not(is_last))
            def _():
                run(x_ref, t_ref, o_ref, False)

            @pl.when(is_last)
            def _():
                run(x_ref, t_ref, o_ref, True)

    return kernel


def dice_bce_loss(inputs, targets, smooth=SMOOTH):
    """Returns (loss_final, dice_loss) exactly like DiceBCELoss.forward."""
    n = int(inputs.size)
    if n == 0:
        raise ValueError("dice_bce_loss: empty input")
    assert int(targets.size) == n

    xf = inputs.reshape(-1)
    tf = targets.reshape(-1)

    rem_lane = n % TL
    if rem_lane:
        # TODO(synk): lane-unaligned n still costs one small HBM pad copy per
        # input to complete the last 128-wide row; a fully copy-free path
        # would need 1-D block handling in the kernel.
        pad = TL - rem_lane
        xf = jnp.pad(xf, (0, pad))
        tf = jnp.pad(tf, (0, pad))
    rows = pl.cdiv(n, TL)

    if rows <= SUB:
        tm = rows                                 # single full-extent block
    else:
        tm = max(SUB, min(TM_MAX, _round_up(pl.cdiv(rows, MIN_TILES), SUB)))
    num_tiles = pl.cdiv(rows, tm)
    mask_last = num_tiles * tm * TL != n          # pad/garbage elements exist
    n_last_valid = n - (num_tiles - 1) * tm * TL  # valid elems in last block

    x2 = xf.reshape(rows, TL)                     # free bitcast reshape
    t2 = tf.reshape(rows, TL)

    parts = pl.pallas_call(
        _make_kernel(tm, num_tiles, n_last_valid, mask_last),
        out_shape=jax.ShapeDtypeStruct((num_tiles, 4, TL), jnp.float32),
        grid=(num_tiles,),
        in_specs=[
            pl.BlockSpec((tm, TL), lambda i: (i, 0)),
            pl.BlockSpec((tm, TL), lambda i: (i, 0)),
        ],
        out_specs=pl.BlockSpec((1, 4, TL), lambda i: (i, 0, 0)),
        compiler_params=pltpu.CompilerParams(
            # Each tile writes its own partial block -> fully parallel grid;
            # on v7x the two TensorCores split the tiles.
            dimension_semantics=("parallel",),
        ),
    )(x2, t2)

    # Tiny final combine (num_tiles x 4 x 128 floats) + loss formula in JAX.
    sums = jnp.sum(parts, axis=(0, 2))            # (4,)
    inter, sx, st, bce_plus = sums[0], sums[1], sums[2], sums[3]

    bce_mean = (bce_plus - inter) / jnp.float32(n)   # restore the -x*t term
    dice = 1.0 - (2.0 * inter + smooth) / (sx + st + smooth)
    loss_final = bce_mean * BCE_WEIGHT + dice * (1.0 - BCE_WEIGHT)
    return loss_final, dice


def _reference(inputs, targets, smooth=SMOOTH):
    x = inputs.reshape(-1).astype(jnp.float32)
    t = targets.reshape(-1).astype(jnp.float32)
    inter = jnp.sum(x * t)
    dice = 1.0 - (2.0 * inter + smooth) / (jnp.sum(x) + jnp.sum(t) + smooth)
    bce = jnp.mean(jnp.maximum(x, 0.0) - x * t + jnp.log1p(jnp.exp(-jnp.abs(x))))
    return bce * BCE_WEIGHT + dice * (1.0 - BCE_WEIGHT), dice


if __name__ == "__main__":
    key = jax.random.PRNGKey(0)
    k1, k2 = jax.random.split(key)

    # Case 1: lane-aligned segmentation logits + binary masks, NCHW (single tile).
    inputs = jax.random.normal(k1, (2, 4, 16, 16), dtype=jnp.float32)
    targets = (jax.random.uniform(k2, (2, 4, 16, 16)) > 0.5).astype(jnp.float32)
    loss, dice = dice_bce_loss(inputs, targets)
    jax.block_until_ready((loss, dice))
    ref_loss, ref_dice = _reference(inputs, targets)
    assert jnp.allclose(loss, ref_loss, atol=1e-5), (loss, ref_loss)
    assert jnp.allclose(dice, ref_dice, atol=1e-5), (dice, ref_dice)

    # Case 2: lane-unaligned size -> exercises the pad + masked-last-tile path.
    inputs2 = jax.random.normal(k1, (2, 1, 15, 17), dtype=jnp.float32)
    targets2 = (jax.random.uniform(k2, (2, 1, 15, 17)) > 0.5).astype(jnp.float32)
    loss2, dice2 = dice_bce_loss(inputs2, targets2)
    jax.block_until_ready((loss2, dice2))
    ref_loss2, ref_dice2 = _reference(inputs2, targets2)
    assert jnp.allclose(loss2, ref_loss2, atol=1e-5), (loss2, ref_loss2)
    assert jnp.allclose(dice2, ref_dice2, atol=1e-5), (dice2, ref_dice2)

    # Case 3: bf16 targets (exact 0/1) -> half the HBM traffic, same result.
    loss3, dice3 = dice_bce_loss(inputs, targets.astype(jnp.bfloat16))
    jax.block_until_ready((loss3, dice3))
    assert jnp.allclose(loss3, ref_loss, atol=1e-5), (loss3, ref_loss)
    assert jnp.allclose(dice3, ref_dice, atol=1e-5), (dice3, ref_dice)

    # Case 4: multi-tile aligned input -> exercises the fori_loop streaming path
    # and the 8-way parallel grid (no masking, no padding).
    inputs4 = jax.random.normal(k1, (2, 4, 64, 64), dtype=jnp.float32)
    targets4 = (jax.random.uniform(k2, (2, 4, 64, 64)) > 0.5).astype(jnp.float32)
    loss4, dice4 = dice_bce_loss(inputs4, targets4)
    jax.block_until_ready((loss4, dice4))
    ref_loss4, ref_dice4 = _reference(inputs4, targets4)
    assert jnp.allclose(loss4, ref_loss4, atol=1e-5), (loss4, ref_loss4)
    assert jnp.allclose(dice4, ref_dice4, atol=1e-5), (dice4, ref_dice4)

    # Case 5: multi-tile, unaligned size -> exercises the pl.when masked /
    # unmasked split across tiles.
    inputs5 = jax.random.normal(k1, (3, 3, 30, 30), dtype=jnp.float32)
    targets5 = (jax.random.uniform(k2, (3, 3, 30, 30)) > 0.5).astype(jnp.float32)
    loss5, dice5 = dice_bce_loss(inputs5, targets5)
    jax.block_until_ready((loss5, dice5))
    ref_loss5, ref_dice5 = _reference(inputs5, targets5)
    assert jnp.allclose(loss5, ref_loss5, atol=1e-5), (loss5, ref_loss5)
    assert jnp.allclose(dice5, ref_dice5, atol=1e-5), (dice5, ref_dice5)

    print("KERNEL_OK")
</pallas_src>

<mosaic_0001>
module attributes {stable_mosaic.version = 11 : i64} {
  func.func @kernel(%arg0: i32, %arg1: memref<16x128xf32, #tpu.memory_space<vmem>>, %arg2: memref<16x128xf32, #tpu.memory_space<vmem>>, %arg3: memref<1x4x128xf32, #tpu.memory_space<vmem>>) attributes {dimension_semantics = [#tpu.dimension_semantics<parallel>], iteration_bounds = array<i64: 1>, scalar_prefetch = 0 : i64, scratch_operands = 0 : i64, tpu.core_type = #tpu.core_type<tc>, window_params = [{transform_indices = @transform_0, window_bounds = array<i64: 16, 128>}, {transform_indices = @transform_1, window_bounds = array<i64: 16, 128>}, {transform_indices = @transform_2, window_bounds = array<i64: 1, 4, 128>}]} {
    %c0 = arith.constant 0 : index
    %c0_0 = arith.constant 0 : index
    %0 = vector.load %arg1[%c0, %c0_0] : memref<16x128xf32, #tpu.memory_space<vmem>>, vector<16x128xf32>
    %c0_1 = arith.constant 0 : index
    %c0_2 = arith.constant 0 : index
    %1 = vector.load %arg2[%c0_1, %c0_2] : memref<16x128xf32, #tpu.memory_space<vmem>>, vector<16x128xf32>
    %cst = arith.constant 0.000000e+00 : f32
    %2 = vector.broadcast %cst : f32 to vector<16x128xf32>
    %3 = arith.maximumf %0, %2 : vector<16x128xf32>
    %4 = math.absf %0 : vector<16x128xf32>
    %cst_3 = arith.constant 0.000000e+00 : f32
    %5 = vector.broadcast %cst_3 : f32 to vector<16x128xf32>
    %6 = arith.subf %5, %4 : vector<16x128xf32>
    %7 = math.exp %6 : vector<16x128xf32>
    %8 = math.log1p %7 : vector<16x128xf32>
    %9 = arith.addf %3, %8 : vector<16x128xf32>
    %10 = arith.mulf %0, %1 : vector<16x128xf32>
    %cst_4 = arith.constant dense<0.000000e+00> : vector<128xf32>
    %11 = vector.multi_reduction <add>, %10, %cst_4 [0] : vector<16x128xf32> to vector<128xf32>
    %12 = vector.shape_cast %11 : vector<128xf32> to vector<1x128xf32>
    %cst_5 = arith.constant dense<0.000000e+00> : vector<128xf32>
    %13 = vector.multi_reduction <add>, %0, %cst_5 [0] : vector<16x128xf32> to vector<128xf32>
    %14 = vector.shape_cast %13 : vector<128xf32> to vector<1x128xf32>
    %cst_6 = arith.constant dense<0.000000e+00> : vector<128xf32>
    %15 = vector.multi_reduction <add>, %1, %cst_6 [0] : vector<16x128xf32> to vector<128xf32>
    %16 = vector.shape_cast %15 : vector<128xf32> to vector<1x128xf32>
    %cst_7 = arith.constant dense<0.000000e+00> : vector<128xf32>
    %17 = vector.multi_reduction <add>, %9, %cst_7 [0] : vector<16x128xf32> to vector<128xf32>
    %18 = vector.shape_cast %17 : vector<128xf32> to vector<1x128xf32>
    %19 = tpu.concatenate %12, %14, %16, %18 in 0 : vector<1x128xf32>, vector<1x128xf32>, vector<1x128xf32>, vector<1x128xf32> -> vector<4x128xf32>
    %c0_8 = arith.constant 0 : index
    %c0_9 = arith.constant 0 : index
    %c0_10 = arith.constant 0 : index
    %20 = vector.load %arg3[%c0_8, %c0_9, %c0_10] : memref<1x4x128xf32, #tpu.memory_space<vmem>>, vector<1x4x128xf32>
    %21 = vector.shape_cast %20 : vector<1x4x128xf32> to vector<4x128xf32>
    %22 = vector.shape_cast %19 : vector<4x128xf32> to vector<1x4x128xf32>
    tpu.vector_store %arg3[%c0_8, %c0_9, %c0_10], %22 {strides = array<i32>} : memref<1x4x128xf32, #tpu.memory_space<vmem>>, vector<1x4x128xf32>,
    return
  }
  func.func @transform_0(%arg0: i32) -> (i32, i32) {
    %c0_i32 = arith.constant 0 : i32
    %c0_i32_0 = arith.constant 0 : i32
    return %arg0, %c0_i32 : i32, i32
  }
  func.func @transform_1(%arg0: i32) -> (i32, i32) {
    %c0_i32 = arith.constant 0 : i32
    %c0_i32_0 = arith.constant 0 : i32
    return %arg0, %c0_i32 : i32, i32
  }
  func.func @transform_2(%arg0: i32) -> (i32, i32, i32) {
    %c0_i32 = arith.constant 0 : i32
    %c0_i32_0 = arith.constant 0 : i32
    %c0_i32_1 = arith.constant 0 : i32
    return %arg0, %c0_i32, %c0_i32_0 : i32, i32, i32
  }
}

</mosaic_0001>

<bundles_post_ra>
// kernel: tpu_custom_call.1
= control target key start
LH: loop header
LB: loop body
LE: loop exit
PB: predicated region body
PF: predicated region fallthrough
CT: control target
= control target key end

     0   :  { %7 = vsyncpa [#allocation3], 0  ;;  %s253_s0 = inlined_call_operand.hbm [shape: f32[16,128], index: 0, kind: input, shape index: {}]   ;;  %s254_s1 = inlined_call_operand.hbm [shape: f32[16,128], index: 1, kind: input, shape index: {}]   ;;  %s255_s2 = inlined_call_operand.hbm [shape: f32[1,4,128], index: 2, kind: output, shape index: {}]  }
   0x1   :  { %8 = vsyncpa [#allocation6], 0 }
   0x2   :  { %9 = vsyncpa [#allocation4], 0  ;;  %s14_s11 = sshll.u32 %s253_s0, 4  ;;  %s224_s12 = smov [#allocation2]   ;;  %s15_s11 = int_to_ptr.hbm [resolvable:$true] %s14_s11 }
   0x3   :  { %s16_s13 = sshll.u32 %s224_s12, 4  ;;  %s27_s16 = sshll.u32 %s254_s1, 4  ;;  %s17_s13 = int_to_ptr.vmem [resolvable:$true] %s16_s13  ;;  %s28_s16 = int_to_ptr.hbm [resolvable:$true] %s27_s16 }
   0x4   :  { %s225_s17 = smov 128   ;;  %s226_s18 = smov 8  }
   0x5   :  { %22 = dma.hbm_to_vmem [thread:$0]  %s15_s11, 256, %s17_s13, [#allocation3], %s225_s17, %s225_s17, %s226_s18  }
   0x6   :  { %s227_s19 = smov [#allocation5]  }
   0x7   :  { %s29_s20 = sshll.u32 %s227_s19, 4  ;;  %s30_s20 = int_to_ptr.vmem [resolvable:$true] %s29_s20 }
   0x8   :  { %35 = dma.hbm_to_vmem [thread:$0]  %s28_s16, 256, %s30_s20, [#allocation6], %s225_s17, %s225_s17, %s226_s18  }
   0x9   :  { %218 = dma.done.wait [#allocation3], 256  }
   0xa   :  { %219 = vsyncadd [#allocation3], 4294967040 }
   0xb   :  { %220 = dma.done.wait [#allocation6], 256  }
   0xc   :  { %221 = vsyncadd [#allocation6], 4294967040  ;;  %v44_v0 = vld [vmem:[#allocation2] sm:$0xff]  ;;  %v45_v1 = vld [vmem:[#allocation2 + $0x8] sm:$0xff]  ;;  %vm108_vm2 = vcmask 1040384   ;;  %vm110_vm3 = vcmask 1041408  }
   0xd   :  { %v50_v2 = vand.u32 2147483647, %v44_v0  ;;  %v46_v3 = vld [vmem:[#allocation5] sm:$0xff]  ;;  %v47_v4 = vld [vmem:[#allocation5 + $0x8] sm:$0xff]  ;;  %v51_v5 = vand.u32 2147483647, %v45_v1  ;;  %v87_v13 = vadd.f32 %v45_v1, %v44_v0 }
   0xe   :  { %v78_v9 = vmul.f32 %v46_v3, %v44_v0  ;;  %v79_v10 = vmul.f32 %v47_v4, %v45_v1  ;;  %v94_v14 = vadd.f32 %v47_v4, %v46_v3  ;;  %v48_v35 = vmax.f32 %v44_v0, 0.0  ;;  %s228_s0 = smov [#allocation7]   ;;  %s122_s23 = sshll.u32 %s255_s2, 4  ;;  %s123_s23 = int_to_ptr.hbm [resolvable:$true] %s122_s23 }
   0xf   :  { %v52_v6 = vsub.f32 0.0, %v50_v2  ;;  %v53_v7 = vsub.f32 0.0, %v51_v5  ;;  %v88_v17 = vrot.slane %v87_v13, 4  ;;  %v49_v38 = vmax.f32 %v45_v1, 0.0  ;;  %s120_s1 = sshll.u32 %s228_s0, 4  ;;  %s121_s1 = int_to_ptr.vmem [resolvable:$true] %s120_s1 }
  0x10   :  { %v80_v12 = vadd.f32 %v79_v10, %v78_v9  ;;  %v95_v23 = vrot.slane %v94_v14, 4  ;;  %vm112_vm4 = vcmask 1042432  }
  0x11   :  { %v54_v8 = vmul.f32 1.442695, %v52_v6  ;;  %v56_v11 = vmul.f32 1.442695, %v53_v7  ;;  %v89_v26 = vadd.f32 %v88_v17, %v87_v13 }
  0x12   :  { %v81_v16 = vrot.slane %v80_v12, 4  ;;  %v96_v30 = vadd.f32 %v95_v23, %v94_v14 }
  0x13   :  { %138 = vpow2.f32 %v54_v8  ;;  %v90_v33 = vrot.slane %v89_v26, 2 }
  0x14   :  { %140 = vpow2.f32 %v56_v11  ;;  %v82_v25 = vadd.f32 %v81_v16, %v80_v12  ;;  %v97_v41 = vrot.slane %v96_v30, 2 }
  0x15   :  { %v91_v44 = vadd.f32 %v90_v33, %v89_v26 }
  0x16   :  { %v83_v32 = vrot.slane %v82_v25, 2  ;;  %v98_v48 = vadd.f32 %v97_v41, %v96_v30 }
  0x17   :  { %v92_v50 = vrot.slane %v91_v44, 1 }
  0x18   :  { %v84_v43 = vadd.f32 %v83_v32, %v82_v25  ;;  %v99_v53 = vrot.slane %v98_v48, 1 }
  0x19   :  { %v139_v15 = vpop.eup %138  ;;  %v93_v55 = vadd.f32 %v92_v50, %v91_v44 }
  0x1a   :  { %v141_v18 = vpop.eup %140  ;;  %v58_v19 = vadd.f32 1.0, %v139_v15  ;;  %v61_v20 = vmul.f32 -0.5, %v139_v15  ;;  %v64_v27 = vand.u32 2147483647, %v139_v15  ;;  %v85_v49 = vrot.slane %v84_v43, 1 }
  0x1b   :  { %v67_v21 = vadd.f32 1.0, %v141_v18  ;;  %v70_v22 = vmul.f32 -0.5, %v141_v18  ;;  %v73_v29 = vand.u32 2147483647, %v141_v18  ;;  %v100_v58 = vadd.f32 %v99_v53, %v98_v48 }
  0x1c   :  { %142 = vlog2.f32 %v58_v19  ;;  %v62_v24 = vadd.f32 1.0, %v61_v20  ;;  %vm65_vm0 = vcmp.lt.f32.partialorder %v64_v27, 0.0004427343  ;;  %v86_v54 = vadd.f32 %v85_v49, %v84_v43 }
  0x1d   :  { %144 = vlog2.f32 %v67_v21  ;;  %v71_v28 = vadd.f32 1.0, %v70_v22  ;;  %vm74_vm1 = vcmp.lt.f32.partialorder %v73_v29, 0.0004427343 }
  0x1e   :  { %v63_v31 = vmul.f32 %v139_v15, %v62_v24  ;;  %v109_v60 = vsel %vm108_vm2, %v86_v54, %v93_v55 }
  0x1f   :  { %v72_v36 = vmul.f32 %v141_v18, %v71_v28  ;;  %v111_v62 = vsel %vm110_vm3, %v109_v60, %v100_v58 }
  0x22   :  { %v143_v34 = vpop.eup %142 }
  0x23   :  { %v145_v37 = vpop.eup %144  ;;  %v60_v39 = vmul.f32 0.6931472, %v143_v34 }
  0x24   :  { %v69_v40 = vmul.f32 0.6931472, %v145_v37 }
  0x25   :  { %v66_v42 = vsel %vm65_vm0, %v63_v31, %v60_v39 }
  0x26   :  { %v75_v45 = vsel %vm74_vm1, %v72_v36, %v69_v40  ;;  %v76_v46 = vadd.f32 %v66_v42, %v48_v35 }
  0x27   :  { %v77_v47 = vadd.f32 %v75_v45, %v49_v38 }
  0x29   :  { %v101_v51 = vadd.f32 %v77_v47, %v76_v46 }
  0x2b   :  { %v102_v52 = vrot.slane %v101_v51, 4 }
  0x2d   :  { %v103_v56 = vadd.f32 %v102_v52, %v101_v51 }
  0x2f   :  { %v104_v57 = vrot.slane %v103_v56, 2 }
  0x31   :  { %v105_v59 = vadd.f32 %v104_v57, %v103_v56 }
  0x33   :  { %v106_v61 = vrot.slane %v105_v59, 1 }
  0x35   :  { %v107_v63 = vadd.f32 %v106_v61, %v105_v59 }
  0x37   :  { %v113_v0 = vsel %vm112_vm4, %v111_v62, %v107_v63 }
  0x38   :  { %114 = vst [vmem:[#allocation7] sm:$0xf] %v113_v0 }
  0x39   :  { %125 = dma.vmem_to_hbm [thread:$0]  %s121_s1, 64, %s123_s23, [#allocation4]  }
  0x3a   :  { %222 = dma.done.wait [#allocation4], 64  }
  0x3b   :  { %223 = vsyncadd [#allocation4], 4294967232 }
  0x3c   :  { %130 = vsyncpa [#allocation3], 1 }
  0x3d   :  { %131 = vsyncpa [#allocation6], 1 }
  0x3e   :  { %132 = vsyncpa [#allocation4], 1 }

</bundles_post_ra>
